<compile_context>
chip_gen: v6e
topology: v6e:2x2x1
jax: 0.10.0
libtpu: 0.0.40
codegen_flags: <defaults>
</compile_context>

<pallas_src>
import jax
import jax.numpy as jnp
from jax.experimental import pallas as pl
from jax.experimental.pallas import tpu as pltpu

AUTO_ENCODER_INTERMEDIATE = 64
AUTO_ENCODER_ENCODING = 16

_LANE = 128
_SUBLANE = 8


def _round_up(n: int, m: int) -> int:
    return ((n + m - 1) // m) * m


def _cores_per_chip() -> int:
    """2 TensorCores per chip on v7x, 1 elsewhere."""
    try:
        kind = jax.devices()[0].device_kind.lower()
        if "v7" in kind:
            return 2
    except Exception:
        pass
    return 1


def _vmem_per_core_bytes() -> int:
    cap = 64 << 20
    try:
        cap = int(pltpu.get_tpu_info().vmem_capacity_bytes)
    except Exception:
        pass
    if _cores_per_chip() > 1:
        # v7x has 64 MiB per TensorCore; clamp in case the query is chip-level.
        cap = min(cap, 64 << 20)
    return cap


def _choose_batch_tile(batch: int, d: int, cores: int,
                       vmem_cap: int, weight_bytes: int) -> int:
    """Batch tile: <=512 rows (HBM roofline saturates there), sized so the
    double-buffered f32-in + bf16-out tiles plus resident weights fit in
    ~half of per-core VMEM.  On v7x, shrink so each TensorCore gets >=4
    pipelined grid steps when the batch allows."""
    bytes_per_row = 2 * (4 * d) + 2 * (2 * d)          # dbl-buf f32 in + bf16 out
    budget = max(vmem_cap // 2 - 2 * weight_bytes, 1 << 20)
    cap = max(_SUBLANE, (budget // bytes_per_row) // _SUBLANE * _SUBLANE)
    cap = min(cap, 512)
    cap = min(cap, _round_up(batch, _SUBLANE))         # never bigger than the batch
    if cores > 1:
        min_steps = 4 * cores                          # >=4 steps per core on v7x
        cap = min(cap, max(_SUBLANE,
                           _round_up(pl.cdiv(batch, min_steps), _SUBLANE)))
    return max(_SUBLANE, cap)


def _encoder_mlp_kernel(x_ref,
                        w1_ref, b1_ref,
                        w2_ref, b2_ref,
                        w3_ref, b3_ref,
                        w4_ref, b4_ref,
                        o_ref):
    """Fused 4x (Linear + ReLU).  x arrives f32, is cast to bf16 in VMEM;
    matmuls are bf16 MXU with f32 accumulation; bias-add and ReLU are f32;
    activations travel bf16 between layers."""
    def layer(h, w_ref, b_ref):
        acc = jnp.dot(h, w_ref[...], preferred_element_type=jnp.float32)
        return jnp.maximum(acc + b_ref[...], 0.0)

    x = x_ref[...].astype(jnp.bfloat16)                          # in-kernel cast
    h = layer(x, w1_ref, b1_ref).astype(jnp.bfloat16)            # fc1 + relu
    h = layer(h, w2_ref, b2_ref).astype(jnp.bfloat16)            # fc2 + relu (encoding)
    h = layer(h, w3_ref, b3_ref).astype(jnp.bfloat16)            # fc3 + relu
    h = layer(h, w4_ref, b4_ref)                                 # fc4 + relu
    o_ref[...] = h.astype(o_ref.dtype)


def encoder_forward(x, params, out_dtype=jnp.bfloat16):
    """EncoderTrainingNetwork.forward.

    x: (B, input_output_size) float32
    params: dict w1..w4 shaped (in, out) and b1..b4 shaped (1, out), float32.
    Returns: (B, input_output_size) in `out_dtype` (bf16 default, f32 opt-in).
    """
    B, D = x.shape
    hidden = params["w1"].shape[1]
    enc = params["w2"].shape[1]

    h_pad = _round_up(hidden, _LANE)
    e_pad = _round_up(enc, _LANE)

    def padw(w, rows, cols):  # zero-pad and cast weights to bf16
        return jnp.pad(w, ((0, rows - w.shape[0]),
                           (0, cols - w.shape[1]))).astype(jnp.bfloat16)

    def padb(b, cols):        # biases stay f32 (added post-MXU)
        return jnp.pad(b, ((0, 0), (0, cols - b.shape[1]))).astype(jnp.float32)

    # Input/output dim D stays unpadded; only hidden/encoding dims are padded.
    w1 = padw(params["w1"], D, h_pad);     b1 = padb(params["b1"], h_pad)
    w2 = padw(params["w2"], h_pad, e_pad); b2 = padb(params["b2"], e_pad)
    w3 = padw(params["w3"], e_pad, h_pad); b3 = padb(params["b3"], h_pad)
    w4 = padw(params["w4"], h_pad, D);     b4 = padb(params["b4"], D)

    weight_bytes = sum(int(a.size) * a.dtype.itemsize
                       for a in (w1, b1, w2, b2, w3, b3, w4, b4))
    cores = _cores_per_chip()
    vmem_cap = _vmem_per_core_bytes()

    batch_tile = _choose_batch_tile(B, D, cores, vmem_cap, weight_bytes)
    grid = (pl.cdiv(B, batch_tile),)   # partial last block is masked by Pallas

    # Weights/biases are resident in VMEM (constant index_map).  For huge D the
    # default double-buffering of w1/w4 could overflow v7x's 64 MiB VMEM, so
    # fall back to single-buffering them.
    single_buffer_weights = 2 * weight_bytes > vmem_cap // 3

    def resident(shape):
        if single_buffer_weights:
            return pl.BlockSpec(shape, lambda i: (0, 0),
                                pipeline_mode=pl.Buffered(1))
        return pl.BlockSpec(shape, lambda i: (0, 0))

    dbl_buf_tile_bytes = batch_tile * D * (2 * 4 + 2 * 2)   # f32 in + bf16 out
    resident_weight_bytes = weight_bytes * (1 if single_buffer_weights else 2)
    vmem_needed = dbl_buf_tile_bytes + resident_weight_bytes + (8 << 20)
    vmem_limit = int(min(max(vmem_needed, 8 << 20), vmem_cap - (8 << 20)))

    # TODO(synk): on v7x, verify the single "parallel" batch axis shards across
    # both TensorCores; if the profile shows one core idle, switch to an
    # explicit leading core axis with pltpu.CORE_PARALLEL / pl.core_map.
    out = pl.pallas_call(
        _encoder_mlp_kernel,
        out_shape=jax.ShapeDtypeStruct((B, D), out_dtype),
        grid_spec=pltpu.PrefetchScalarGridSpec(
            num_scalar_prefetch=0,
            grid=grid,
            in_specs=[
                pl.BlockSpec((batch_tile, D), lambda i: (i, 0)),  # x tile (f32)
                resident(w1.shape), resident(b1.shape),
                resident(w2.shape), resident(b2.shape),
                resident(w3.shape), resident(b3.shape),
                resident(w4.shape), resident(b4.shape),
            ],
            out_specs=pl.BlockSpec((batch_tile, D), lambda i: (i, 0)),
        ),
        compiler_params=pltpu.CompilerParams(
            dimension_semantics=("parallel",),
            vmem_limit_bytes=vmem_limit),
    )(x, w1, b1, w2, b2, w3, b3, w4, b4)

    return out


def init_params(key, input_output_size,
                hidden=AUTO_ENCODER_INTERMEDIATE,
                encoding=AUTO_ENCODER_ENCODING):
    """Deterministic synthetic init (PyTorch-style uniform fan-in bounds)."""
    dims = [(input_output_size, hidden),
            (hidden, encoding),
            (encoding, hidden),
            (hidden, input_output_size)]
    params = {}
    keys = jax.random.split(key, 2 * len(dims))
    for n, (fan_in, fan_out) in enumerate(dims, start=1):
        bound = 1.0 / jnp.sqrt(jnp.float32(fan_in))
        params[f"w{n}"] = jax.random.uniform(
            keys[2 * (n - 1)], (fan_in, fan_out),
            minval=-bound, maxval=bound, dtype=jnp.float32)
        params[f"b{n}"] = jax.random.uniform(
            keys[2 * (n - 1) + 1], (1, fan_out),
            minval=-bound, maxval=bound, dtype=jnp.float32)
    return params


def _reference_forward(x, params, out_dtype=jnp.bfloat16):
    """Pure-JAX reference with the same bf16 casts as the kernel."""
    h = x.astype(jnp.bfloat16)
    for n in range(1, 5):
        w = params[f"w{n}"].astype(jnp.bfloat16)
        acc = jnp.dot(h, w, preferred_element_type=jnp.float32)
        h = jnp.maximum(acc + params[f"b{n}"], 0.0)
        if n < 4:
            h = h.astype(jnp.bfloat16)
    return h.astype(out_dtype)


# TODO(synk): training_step (MSELoss + SGD backward/update) is not translated;
# only the forward pass is implemented as requested.
# NOTE: forward runs weights/activations in bf16 (f32 accumulation); this is a
# deliberate inference-oriented numerics change vs. the f32 PyTorch model.
# ReLU is applied after fc4 exactly as in the PyTorch module's forward().

if __name__ == "__main__":
    key = jax.random.PRNGKey(0)
    k_x, k_p = jax.random.split(key)

    INPUT_OUTPUT_SIZE = 100   # non-multiple of 128 -> exercises unpadded lane path
    BATCH = 20                # non-multiple of tile -> exercises partial-block masking

    x = jax.random.normal(k_x, (BATCH, INPUT_OUTPUT_SIZE), dtype=jnp.float32)
    params = init_params(k_p, INPUT_OUTPUT_SIZE)

    out = encoder_forward(x, params)
    out = jax.block_until_ready(out)

    ref = _reference_forward(x, params)
    assert out.shape == (BATCH, INPUT_OUTPUT_SIZE)
    assert out.dtype == jnp.bfloat16
    assert jnp.allclose(out.astype(jnp.float32), ref.astype(jnp.float32),
                        atol=2e-2, rtol=2e-2)

    print("KERNEL_OK")
</pallas_src>

<mosaic_0001>
module attributes {stable_mosaic.version = 11 : i64} {
  func.func @_encoder_mlp_kernel(%arg0: i32, %arg1: memref<24x100xf32, #tpu.memory_space<vmem>>, %arg2: memref<100x128xbf16, #tpu.memory_space<vmem>>, %arg3: memref<1x128xf32, #tpu.memory_space<vmem>>, %arg4: memref<128x128xbf16, #tpu.memory_space<vmem>>, %arg5: memref<1x128xf32, #tpu.memory_space<vmem>>, %arg6: memref<128x128xbf16, #tpu.memory_space<vmem>>, %arg7: memref<1x128xf32, #tpu.memory_space<vmem>>, %arg8: memref<128x100xbf16, #tpu.memory_space<vmem>>, %arg9: memref<1x100xf32, #tpu.memory_space<vmem>>, %arg10: memref<24x100xbf16, #tpu.memory_space<vmem>>) attributes {dimension_semantics = [#tpu.dimension_semantics<parallel>], iteration_bounds = array<i64: 1>, scalar_prefetch = 0 : i64, scratch_operands = 0 : i64, tpu.core_type = #tpu.core_type<tc>, window_params = [{transform_indices = @transform_0, window_bounds = array<i64: 24, 100>}, {pipeline_mode = #tpu.pipeline_mode<synchronous>, transform_indices = @transform_1, window_bounds = array<i64: 100, 128>}, {pipeline_mode = #tpu.pipeline_mode<synchronous>, transform_indices = @transform_2, window_bounds = array<i64: 1, 128>}, {pipeline_mode = #tpu.pipeline_mode<synchronous>, transform_indices = @transform_3, window_bounds = array<i64: 128, 128>}, {pipeline_mode = #tpu.pipeline_mode<synchronous>, transform_indices = @transform_4, window_bounds = array<i64: 1, 128>}, {pipeline_mode = #tpu.pipeline_mode<synchronous>, transform_indices = @transform_5, window_bounds = array<i64: 128, 128>}, {pipeline_mode = #tpu.pipeline_mode<synchronous>, transform_indices = @transform_6, window_bounds = array<i64: 1, 128>}, {pipeline_mode = #tpu.pipeline_mode<synchronous>, transform_indices = @transform_7, window_bounds = array<i64: 128, 100>}, {pipeline_mode = #tpu.pipeline_mode<synchronous>, transform_indices = @transform_8, window_bounds = array<i64: 1, 100>}, {transform_indices = @transform_9, window_bounds = array<i64: 24, 100>}]} {
    %c0 = arith.constant 0 : index
    %c0_0 = arith.constant 0 : index
    %0 = vector.load %arg1[%c0, %c0_0] : memref<24x100xf32, #tpu.memory_space<vmem>>, vector<24x100xf32>
    %1 = arith.truncf %0 : vector<24x100xf32> to vector<24x100xbf16>
    %c0_1 = arith.constant 0 : index
    %c0_2 = arith.constant 0 : index
    %2 = vector.load %arg2[%c0_1, %c0_2] : memref<100x128xbf16, #tpu.memory_space<vmem>>, vector<100x128xbf16>
    %cst = arith.constant dense<0.000000e+00> : vector<24x128xf32>
    %3 = tpu.matmul %1, %2, %cst {dimension_numbers = #tpu.dot_dimension_numbers<[1], [0], [0], [1], [0, 0, 1, 1], [], []>} : vector<24x100xbf16>, vector<100x128xbf16>, vector<24x128xf32> -> vector<24x128xf32>
    %c0_3 = arith.constant 0 : index
    %c0_4 = arith.constant 0 : index
    %4 = vector.load %arg3[%c0_3, %c0_4] : memref<1x128xf32, #tpu.memory_space<vmem>>, vector<1x128xf32>
    %5 = vector.broadcast %4 : vector<1x128xf32> to vector<24x128xf32>
    %6 = arith.addf %3, %5 : vector<24x128xf32>
    %cst_5 = arith.constant 0.000000e+00 : f32
    %7 = vector.broadcast %cst_5 : f32 to vector<24x128xf32>
    %8 = arith.maximumf %6, %7 : vector<24x128xf32>
    %9 = arith.truncf %8 : vector<24x128xf32> to vector<24x128xbf16>
    %c0_6 = arith.constant 0 : index
    %c0_7 = arith.constant 0 : index
    %10 = vector.load %arg4[%c0_6, %c0_7] : memref<128x128xbf16, #tpu.memory_space<vmem>>, vector<128x128xbf16>
    %cst_8 = arith.constant dense<0.000000e+00> : vector<24x128xf32>
    %11 = tpu.matmul %9, %10, %cst_8 {dimension_numbers = #tpu.dot_dimension_numbers<[1], [0], [0], [1], [0, 0, 1, 1], [], []>} : vector<24x128xbf16>, vector<128x128xbf16>, vector<24x128xf32> -> vector<24x128xf32>
    %c0_9 = arith.constant 0 : index
    %c0_10 = arith.constant 0 : index
    %12 = vector.load %arg5[%c0_9, %c0_10] : memref<1x128xf32, #tpu.memory_space<vmem>>, vector<1x128xf32>
    %13 = vector.broadcast %12 : vector<1x128xf32> to vector<24x128xf32>
    %14 = arith.addf %11, %13 : vector<24x128xf32>
    %cst_11 = arith.constant 0.000000e+00 : f32
    %15 = vector.broadcast %cst_11 : f32 to vector<24x128xf32>
    %16 = arith.maximumf %14, %15 : vector<24x128xf32>
    %17 = arith.truncf %16 : vector<24x128xf32> to vector<24x128xbf16>
    %c0_12 = arith.constant 0 : index
    %c0_13 = arith.constant 0 : index
    %18 = vector.load %arg6[%c0_12, %c0_13] : memref<128x128xbf16, #tpu.memory_space<vmem>>, vector<128x128xbf16>
    %cst_14 = arith.constant dense<0.000000e+00> : vector<24x128xf32>
    %19 = tpu.matmul %17, %18, %cst_14 {dimension_numbers = #tpu.dot_dimension_numbers<[1], [0], [0], [1], [0, 0, 1, 1], [], []>} : vector<24x128xbf16>, vector<128x128xbf16>, vector<24x128xf32> -> vector<24x128xf32>
    %c0_15 = arith.constant 0 : index
    %c0_16 = arith.constant 0 : index
    %20 = vector.load %arg7[%c0_15, %c0_16] : memref<1x128xf32, #tpu.memory_space<vmem>>, vector<1x128xf32>
    %21 = vector.broadcast %20 : vector<1x128xf32> to vector<24x128xf32>
    %22 = arith.addf %19, %21 : vector<24x128xf32>
    %cst_17 = arith.constant 0.000000e+00 : f32
    %23 = vector.broadcast %cst_17 : f32 to vector<24x128xf32>
    %24 = arith.maximumf %22, %23 : vector<24x128xf32>
    %25 = arith.truncf %24 : vector<24x128xf32> to vector<24x128xbf16>
    %c0_18 = arith.constant 0 : index
    %c0_19 = arith.constant 0 : index
    %26 = vector.load %arg8[%c0_18, %c0_19] : memref<128x100xbf16, #tpu.memory_space<vmem>>, vector<128x100xbf16>
    %cst_20 = arith.constant dense<0.000000e+00> : vector<24x100xf32>
    %27 = tpu.matmul %25, %26, %cst_20 {dimension_numbers = #tpu.dot_dimension_numbers<[1], [0], [0], [1], [0, 0, 1, 1], [], []>} : vector<24x128xbf16>, vector<128x100xbf16>, vector<24x100xf32> -> vector<24x100xf32>
    %c0_21 = arith.constant 0 : index
    %c0_22 = arith.constant 0 : index
    %28 = vector.load %arg9[%c0_21, %c0_22] : memref<1x100xf32, #tpu.memory_space<vmem>>, vector<1x100xf32>
    %29 = vector.broadcast %28 : vector<1x100xf32> to vector<24x100xf32>
    %30 = arith.addf %27, %29 : vector<24x100xf32>
    %cst_23 = arith.constant 0.000000e+00 : f32
    %31 = vector.broadcast %cst_23 : f32 to vector<24x100xf32>
    %32 = arith.maximumf %30, %31 : vector<24x100xf32>
    %33 = arith.truncf %32 : vector<24x100xf32> to vector<24x100xbf16>
    %c0_24 = arith.constant 0 : index
    %c0_25 = arith.constant 0 : index
    %34 = vector.load %arg10[%c0_24, %c0_25] : memref<24x100xbf16, #tpu.memory_space<vmem>>, vector<24x100xbf16>
    tpu.vector_store %arg10[%c0_24, %c0_25], %33 {strides = array<i32>} : memref<24x100xbf16, #tpu.memory_space<vmem>>, vector<24x100xbf16>,
    return
  }
  func.func @transform_0(%arg0: i32) -> (i32, i32) {
    %c0_i32 = arith.constant 0 : i32
    %c0_i32_0 = arith.constant 0 : i32
    return %arg0, %c0_i32 : i32, i32
  }
  func.func @transform_1(%arg0: i32) -> (i32, i32) {
    %c0_i32 = arith.constant 0 : i32
    %c0_i32_0 = arith.constant 0 : i32
    %c0_i32_1 = arith.constant 0 : i32
    return %c0_i32, %c0_i32_0 : i32, i32
  }
  func.func @transform_2(%arg0: i32) -> (i32, i32) {
    %c0_i32 = arith.constant 0 : i32
    %c0_i32_0 = arith.constant 0 : i32
    %c0_i32_1 = arith.constant 0 : i32
    return %c0_i32, %c0_i32_0 : i32, i32
  }
  func.func @transform_3(%arg0: i32) -> (i32, i32) {
    %c0_i32 = arith.constant 0 : i32
    %c0_i32_0 = arith.constant 0 : i32
    %c0_i32_1 = arith.constant 0 : i32
    return %c0_i32, %c0_i32_0 : i32, i32
  }
  func.func @transform_4(%arg0: i32) -> (i32, i32) {
    %c0_i32 = arith.constant 0 : i32
    %c0_i32_0 = arith.constant 0 : i32
    %c0_i32_1 = arith.constant 0 : i32
    return %c0_i32, %c0_i32_0 : i32, i32
  }
  func.func @transform_5(%arg0: i32) -> (i32, i32) {
    %c0_i32 = arith.constant 0 : i32
    %c0_i32_0 = arith.constant 0 : i32
    %c0_i32_1 = arith.constant 0 : i32
    return %c0_i32, %c0_i32_0 : i32, i32
  }
  func.func @transform_6(%arg0: i32) -> (i32, i32) {
    %c0_i32 = arith.constant 0 : i32
    %c0_i32_0 = arith.constant 0 : i32
    %c0_i32_1 = arith.constant 0 : i32
    return %c0_i32, %c0_i32_0 : i32, i32
  }
  func.func @transform_7(%arg0: i32) -> (i32, i32) {
    %c0_i32 = arith.constant 0 : i32
    %c0_i32_0 = arith.constant 0 : i32
    %c0_i32_1 = arith.constant 0 : i32
    return %c0_i32, %c0_i32_0 : i32, i32
  }
  func.func @transform_8(%arg0: i32) -> (i32, i32) {
    %c0_i32 = arith.constant 0 : i32
    %c0_i32_0 = arith.constant 0 : i32
    %c0_i32_1 = arith.constant 0 : i32
    return %c0_i32, %c0_i32_0 : i32, i32
  }
  func.func @transform_9(%arg0: i32) -> (i32, i32) {
    %c0_i32 = arith.constant 0 : i32
    %c0_i32_0 = arith.constant 0 : i32
    return %arg0, %c0_i32 : i32, i32
  }
}

</mosaic_0001>

<bundles_post_ra>
// kernel: tpu_custom_call.1
= control target key start
LH: loop header
LB: loop body
LE: loop exit
PB: predicated region body
PF: predicated region fallthrough
CT: control target
= control target key end

     0   :  { %14 = vsyncpa [#allocation3], 0  ;;  %s1015_s0 = inlined_call_operand.hbm [shape: f32[20,100], index: 0, kind: input, shape index: {}]   ;;  %s1016_s1 = inlined_call_operand.vmem [shape: bf16[100,128], index: 1, kind: input, shape index: {}]   ;;  %s1017_s2 = inlined_call_operand.vmem [shape: f32[1,128], index: 2, kind: input, shape index: {}]   ;;  %s1018_s3 = inlined_call_operand.vmem [shape: bf16[128,128], index: 3, kind: input, shape index: {}]   ;;  %s1019_s4 = inlined_call_operand.vmem [shape: f32[1,128], index: 4, kind: input, shape index: {}]   ;;  %s1020_s5 = inlined_call_operand.hbm [shape: bf16[128,128], index: 5, kind: input, shape index: {}]   ;;  %s1021_s6 = inlined_call_operand.vmem [shape: f32[1,128], index: 6, kind: input, shape index: {}]   ;;  %s1022_s7 = inlined_call_operand.vmem [shape: bf16[128,100], index: 7, kind: input, shape index: {}]   ;;  %s1023_s8 = inlined_call_operand.vmem [shape: f32[1,100], index: 8, kind: input, shape index: {}]   ;;  %s1024_s9 = inlined_call_operand.hbm [shape: bf16[20,100], index: 9, kind: output, shape index: {}]  }
   0x1   :  { %15 = vsyncpa [#allocation6], 0 }
   0x2   :  { %16 = vsyncpa [#allocation4], 0  ;;  %s860_s30 = smov [#allocation2]  }
   0x3   :  { %s22_s10 = sshll.u32 %s860_s30, 4  ;;  %s23_s10 = int_to_ptr.vmem [resolvable:$true] %s22_s10 }
   0x4   :  { %s802_s11 = scalar_lea.vmem %s23_s10, 384  ;;  %p807_p1 = scmp.lt.s32.totalorder %s23_s10, %s23_s10 }
   0x5   :  { %p803_p0 = scmp.ne.s32.totalorder %s23_s10, %s802_s11  ;;  %p808_p2 = scmp.lt.s32.totalorder %s802_s11, %s802_s11 }
   0x7   :  { %p809_p3 = por %p808_p2, %p807_p1 }
   0x9   :  { %p810_p4 = pnand %p809_p3, %p803_p0 }
   0xb   :  { %813 = shalt.err (!%p810_p4)
}
   0xc   :  { %s861_s12 = smov 128   ;;  %s862_s13 = smov 8  }
   0xd   :  { %28 = dma.hbm_to_vmem [thread:$0]  %s1015_s0, 384, %s23_s10, [#allocation3], %s861_s12, %s861_s12, %s862_s13  }
   0xe   :  { %s863_s16 = smov [#allocation5]  }
   0xf   :  { %s42_s17 = sshll.u32 %s863_s16, 4  ;;  %s43_s17 = int_to_ptr.vmem [resolvable:$true] %s42_s17 }
  0x10   :  { %s822_s18 = scalar_lea.vmem %s43_s17, 1024  ;;  %p827_p6 = scmp.lt.s32.totalorder %s43_s17, %s43_s17 }
  0x11   :  { %p823_p5 = scmp.ne.s32.totalorder %s43_s17, %s822_s18  ;;  %p828_p7 = scmp.lt.s32.totalorder %s822_s18, %s822_s18 }
  0x13   :  { %p829_p8 = por %p828_p7, %p827_p6 }
  0x15   :  { %p830_p9 = pnand %p829_p8, %p823_p5 }
  0x17   :  { %833 = shalt.err (!%p830_p9)
}
  0x18   :  { %s864_s19 = smov 64   ;;  %s865_s20 = smov 4  }
  0x19   :  { %48 = dma.hbm_to_vmem [thread:$0]  %s1020_s5, 1024, %s43_s17, [#allocation6], %s864_s19, %s864_s19, %s865_s20  }
  0x1a   :  { %854 = dma.done.wait [#allocation3], 384  }
  0x1b   :  { %855 = vsyncadd [#allocation3], 4294966912 }
  0x1c   :  { %856 = dma.done.wait [#allocation6], 1024  }
  0x1d   :  { %857 = vsyncadd [#allocation6], 4294966272  ;;  %vm133_vm0 = vcmask 1041408   ;;  %v763_v0 = vld [vmem:[%s1016_s1 + $0x30] ss:$0 sps:$4 sm:$0x33]  }
  0x1e   :  { %v764_v1 = vld [vmem:[%s1016_s1 + $0x28] sm:$0xff]   ;;  %755 = vmatprep.subr.msk.bf16.mxu0 %vm133_vm0, %v763_v0  ;;  %v135_v2 = vsel %vm133_vm0, %v763_v0, 0  ;;  %v765_v3 = vld [vmem:[%s1016_s1 + $0x20] sm:$0xff]   ;;  %v766_v5 = vld [vmem:[%s1016_s1 + $0x18] sm:$0xff]   ;;  %vm126_vm1 = vcmask 818176   ;;  %vm573_vm2 = vcmask 814080  }
  0x1f   :  { %678 = vmatpush3.bf16.msra.mxu0 %v135_v2  ;;  %v62_v4 = vld [vmem:[#allocation2] sm:$0xff]  ;;  %v63_v6 = vld [vmem:[#allocation2 + $0x8] sm:$0xff]  ;;  %v770_v8 = vld [vmem:[%s1018_s3 + $0x38] sm:$0xff]  }
  0x20   :  { %679 = vmatprep.subr.bf16.mxu0 %v764_v1  ;;  %v65_v7 = vpack.c.bf16 %v63_v6, %v62_v4  ;;  %v771_v9 = vld [vmem:[%s1018_s3 + $0x30] sm:$0xff]   ;;  %695 = vmatprep.subr.bf16.mxu1 %v770_v8  ;;  %v772_v11 = vld [vmem:[%s1018_s3 + $0x28] sm:$0xff]   ;;  %v773_v13 = vld [vmem:[%s1018_s3 + $0x20] sm:$0xff]  }
  0x21   :  { %v767_v10 = vld [vmem:[%s1016_s1 + $0x10] sm:$0xff]   ;;  %696 = vmatpush3.bf16.msra.mxu1 %v770_v8  ;;  %v768_v12 = vld [vmem:[%s1016_s1 + $0x8] sm:$0xff]   ;;  %v769_v14 = vld [vmem:[%s1016_s1] sm:$0xff]  }
  0x22   :  { %691 = vmatprep.mubr.msk.bf16.mxu0 %vm126_vm1, %v65_v7  ;;  %697 = vmatprep.subr.bf16.mxu1 %v771_v9  ;;  %v774_v15 = vld [vmem:[%s1018_s3 + $0x18] sm:$0xff]   ;;  %v64_v16 = vld [vmem:[#allocation2 + $0x10] sm:$0xff]  ;;  %v776_v19 = vld [vmem:[%s1018_s3 + $0x8] sm:$0xff]  }
  0x23   :  { %680 = vmatpush3.bf16.msra.mxu0 %v764_v1  ;;  %v66_v17 = vpack.c.bf16 %v64_v16, %v64_v16  ;;  %v775_v18 = vld [vmem:[%s1018_s3 + $0x10] sm:$0xff]   ;;  %v777_v20 = vld [vmem:[%s1018_s3] sm:$0xff]   ;;  %v779_v22 = vld [vmem:[#allocation5 + $0x30] sm:$0xff]  }
  0x24   :  { %681 = vmatprep.subr.bf16.mxu0 %v765_v3  ;;  %v778_v21 = vld [vmem:[#allocation5 + $0x38] sm:$0xff]   ;;  %v780_v23 = vld [vmem:[#allocation5 + $0x28] sm:$0xff]   ;;  %v781_v24 = vld [vmem:[#allocation5 + $0x20] sm:$0xff]  }
  0x25   :  { %698 = vmatpush3.bf16.msra.mxu1 %v771_v9  ;;  %v782_v25 = vld [vmem:[#allocation5 + $0x18] sm:$0xff]   ;;  %v595_v27 = vld [vmem:[%s1017_s2] ss:$0 sm:$0xff]  ;;  %v783_v39 = vld [vmem:[#allocation5 + $0x10] sm:$0xff]  }
  0x26   :  { %699 = vmatprep.subr.bf16.mxu1 %v772_v11  ;;  %v784_v40 = vld [vmem:[#allocation5 + $0x8] sm:$0xff]   ;;  %v785_v41 = vld [vmem:[#allocation5] sm:$0xff]   ;;  %v787_v43 = vld [vmem:[%s1022_s7 + $0x30] sm:$0xff]  }
  0x27   :  { %682 = vmatpush3.bf16.msra.mxu0 %v765_v3  ;;  %v786_v42 = vld [vmem:[%s1022_s7 + $0x38] sm:$0xff]   ;;  %v788_v44 = vld [vmem:[%s1022_s7 + $0x28] sm:$0xff]   ;;  %v789_v45 = vld [vmem:[%s1022_s7 + $0x20] sm:$0xff]  }
  0x28   :  { %683 = vmatprep.subr.bf16.mxu0 %v766_v5  ;;  %v790_v46 = vld [vmem:[%s1022_s7 + $0x18] sm:$0xff]   ;;  %v605_v48 = vld [vmem:[%s1019_s4] ss:$0 sm:$0xff]  ;;  %v791_v60 = vld [vmem:[%s1022_s7 + $0x10] sm:$0xff]  }
  0x29   :  { %700 = vmatpush3.bf16.msra.mxu1 %v772_v11  ;;  %v792_v61 = vld [vmem:[%s1022_s7 + $0x8] sm:$0xff]   ;;  %v793_v62 = vld [vmem:[%s1022_s7] sm:$0xff]  }
  0x2a   :  { %701 = vmatprep.subr.bf16.mxu1 %v773_v13  ;;  %v614_v0 = vld [vmem:[%s1021_s6] ss:$0 sm:$0xff]  ;;  %s866_s6 = smov [#allocation7]  }
  0x2b   :  { %684 = vmatpush3.bf16.msra.mxu0 %v766_v5  ;;  %s582_s5 = sshll.u32 %s866_s6, 4  ;;  %s583_s5 = int_to_ptr.vmem [resolvable:$true] %s582_s5 }
  0x2c   :  { %685 = vmatprep.subr.bf16.mxu0 %v767_v10  ;;  %p839_p11 = scmp.lt.s32.totalorder %s583_s5, %s583_s5 }
  0x2d   :  { %702 = vmatpush3.bf16.msra.mxu1 %v773_v13 }
  0x2e   :  { %703 = vmatprep.subr.bf16.mxu1 %v774_v15 }
  0x2f   :  { %686 = vmatpush3.bf16.msra.mxu0 %v767_v10 }
  0x30   :  { %687 = vmatprep.subr.bf16.mxu0 %v768_v12 }
  0x31   :  { %704 = vmatpush3.bf16.msra.mxu1 %v774_v15 }
  0x32   :  { %705 = vmatprep.subr.bf16.mxu1 %v775_v18 }
  0x33   :  { %688 = vmatpush3.bf16.msra.mxu0 %v768_v12  ;;  %v623_v12 = vld [vmem:[%s1023_s8] ss:$0 sm:$0xff]  ;;  %s834_s8 = scalar_lea.vmem %s583_s5, 192 }
  0x34   :  { %689 = vmatprep.subr.bf16.mxu0 %v769_v14  ;;  %p835_p10 = scmp.ne.s32.totalorder %s583_s5, %s834_s8  ;;  %p840_p12 = scmp.lt.s32.totalorder %s834_s8, %s834_s8 }
  0x35   :  { %706 = vmatpush3.bf16.msra.mxu1 %v775_v18 }
  0x36   :  { %707 = vmatprep.subr.bf16.mxu1 %v776_v19  ;;  %p841_p13 = por %p840_p12, %p839_p11 }
  0x37   :  { %690 = vmatpush3.bf16.msra.mxu0 %v769_v14 }
  0x38   :  { %715 = vmatprep.subr.bf16.mxu0 %v778_v21  ;;  %p842_p0 = pnand %p841_p13, %p835_p10 }
  0x39   :  { %708 = vmatpush3.bf16.msra.mxu1 %v776_v19 }
  0x3a   :  { %692 = vmatmul.mubr.msk.bf16.vlgmr.msra.gmra.mxu0 %vm126_vm1, %v66_v17  ;;  %709 = vmatprep.subr.bf16.mxu1 %v777_v20 }
  0x3b   :  { %716 = vmatpush3.bf16.msra.mxu0 %v778_v21 }
  0x3c   :  { %717 = vmatprep.subr.bf16.mxu0 %v779_v22 }
  0x3d   :  { %710 = vmatpush3.bf16.msra.mxu1 %v777_v20 }
  0x3e   :  { %735 = vmatprep.subr.bf16.mxu1 %v786_v42 }
  0x3f   :  { %718 = vmatpush3.bf16.msra.mxu0 %v779_v22 }
  0x40   :  { %719 = vmatprep.subr.bf16.mxu0 %v780_v23 }
  0x43   :  { %720 = vmatpush3.bf16.msra.mxu0 %v780_v23 }
  0x44   :  { %721 = vmatprep.subr.bf16.mxu0 %v781_v24 }
  0x47   :  { %722 = vmatpush3.bf16.msra.mxu0 %v781_v24 }
  0x48   :  { %723 = vmatprep.subr.bf16.mxu0 %v782_v25 }
  0x4b   :  { %724 = vmatpush3.bf16.msra.mxu0 %v782_v25 }
  0x4c   :  { %725 = vmatprep.subr.bf16.mxu0 %v783_v39 }
  0x4f   :  { %726 = vmatpush3.bf16.msra.mxu0 %v783_v39 }
  0x50   :  { %727 = vmatprep.subr.bf16.mxu0 %v784_v40 }
  0x53   :  { %728 = vmatpush3.bf16.msra.mxu0 %v784_v40 }
  0x54   :  { %729 = vmatprep.subr.bf16.mxu0 %v785_v41 }
  0x57   :  { %730 = vmatpush3.bf16.msra.mxu0 %v785_v41 }
  0xfa   :  { %v693_v26 = vpop.f32.mrf.mxu0 }
  0xfb   :  { %v180_v29 = vadd.f32 %v693_v26, %v595_v27 }
  0xfc   :  { %v171_v28 = vpop.f32.mrf.mxu0 }
  0xfd   :  { %v172_v31 = vadd.f32 %v595_v27, %v171_v28  ;;  %v187_v34 = vmax.f32 %v180_v29, 0.0 }
  0xfe   :  { %v694_v30 = vpop.f32.mrf.mxu0 }
  0xff   :  { %v185_v35 = vmax.f32 %v172_v31, 0.0  ;;  %v189_v38 = vpack.c.bf16 %v187_v34, %v187_v34 }
 0x100   :  { %v174_v32 = vpop.f32.mrf.mxu0 }
 0x101   :  { %v175_v33 = vadd.f32 %v595_v27, %v174_v32 }
 0x103   :  { %v186_v36 = vmax.f32 %v175_v33, 0.0 }
 0x105   :  { %v188_v37 = vpack.c.bf16 %v186_v36, %v185_v35 }
 0x107   :  { %711 = vmatprep.mubr.bf16.mxu1 %v188_v37 }
 0x108   :  { %712 = vmatmul.mubr.bf16.vlgmr.msra.gmra.mxu1 %v189_v38 }
 0x109   :  { %736 = vmatpush3.bf16.msra.mxu1 %v786_v42 }
 0x10a   :  { %737 = vmatprep.subr.bf16.mxu1 %v787_v43 }
 0x10d   :  { %738 = vmatpush3.bf16.msra.mxu1 %v787_v43 }
 0x10e   :  { %739 = vmatprep.subr.bf16.mxu1 %v788_v44 }
 0x111   :  { %740 = vmatpush3.bf16.msra.mxu1 %v788_v44 }
 0x112   :  { %741 = vmatprep.subr.bf16.mxu1 %v789_v45 }
 0x115   :  { %742 = vmatpush3.bf16.msra.mxu1 %v789_v45 }
 0x116   :  { %743 = vmatprep.subr.bf16.mxu1 %v790_v46 }
 0x119   :  { %744 = vmatpush3.bf16.msra.mxu1 %v790_v46 }
 0x11a   :  { %745 = vmatprep.subr.bf16.mxu1 %v791_v60 }
 0x11d   :  { %746 = vmatpush3.bf16.msra.mxu1 %v791_v60 }
 0x11e   :  { %747 = vmatprep.subr.bf16.mxu1 %v792_v61 }
 0x121   :  { %748 = vmatpush3.bf16.msra.mxu1 %v792_v61 }
 0x122   :  { %749 = vmatprep.subr.bf16.mxu1 %v793_v62 }
 0x125   :  { %750 = vmatpush3.bf16.msra.mxu1 %v793_v62 }
 0x1c8   :  { %v713_v47 = vpop.f32.mrf.mxu1 }
 0x1c9   :  { %v304_v50 = vadd.f32 %v713_v47, %v605_v48 }
 0x1ca   :  { %v295_v49 = vpop.f32.mrf.mxu1 }
 0x1cb   :  { %v296_v52 = vadd.f32 %v605_v48, %v295_v49  ;;  %v311_v55 = vmax.f32 %v304_v50, 0.0 }
 0x1cc   :  { %v714_v51 = vpop.f32.mrf.mxu1 }
 0x1cd   :  { %v309_v56 = vmax.f32 %v296_v52, 0.0  ;;  %v313_v59 = vpack.c.bf16 %v311_v55, %v311_v55 }
 0x1ce   :  { %v298_v53 = vpop.f32.mrf.mxu1 }
 0x1cf   :  { %v299_v54 = vadd.f32 %v605_v48, %v298_v53 }
 0x1d1   :  { %v310_v57 = vmax.f32 %v299_v54, 0.0 }
 0x1d3   :  { %v312_v58 = vpack.c.bf16 %v310_v57, %v309_v56 }
 0x1d5   :  { %731 = vmatprep.mubr.bf16.mxu0 %v312_v58 }
 0x1d6   :  { %732 = vmatmul.mubr.bf16.vlgmr.msra.gmra.mxu0 %v313_v59 }
 0x296   :  { %v733_v63 = vpop.f32.mrf.mxu0 }
 0x297   :  { %v428_v2 = vadd.f32 %v733_v63, %v614_v0 }
 0x298   :  { %v419_v1 = vpop.f32.mrf.mxu0 }
 0x299   :  { %v420_v4 = vadd.f32 %v614_v0, %v419_v1  ;;  %v435_v7 = vmax.f32 %v428_v2, 0.0 }
 0x29a   :  { %v734_v3 = vpop.f32.mrf.mxu0 }
 0x29b   :  { %v433_v8 = vmax.f32 %v420_v4, 0.0  ;;  %v437_v11 = vpack.c.bf16 %v435_v7, %v435_v7 }
 0x29c   :  { %v422_v5 = vpop.f32.mrf.mxu0 }
 0x29d   :  { %v423_v6 = vadd.f32 %v614_v0, %v422_v5 }
 0x29f   :  { %v434_v9 = vmax.f32 %v423_v6, 0.0 }
 0x2a1   :  { %v436_v10 = vpack.c.bf16 %v434_v9, %v433_v8 }
 0x2a3   :  { %751 = vmatprep.mubr.bf16.mxu1 %v436_v10 }
 0x2a4   :  { %752 = vmatmul.mubr.bf16.vlgmr.msra.gmra.mxu1 %v437_v11 }
 0x364   :  { %v753_v13 = vpop.f32.mrf.mxu1 }
 0x365   :  { %v552_v14 = vadd.f32 %v753_v13, %v623_v12 }
 0x366   :  { %v543_v15 = vpop.f32.mrf.mxu1 }
 0x367   :  { %v559_v16 = vmax.f32 %v552_v14, 0.0  ;;  %v544_v17 = vadd.f32 %v623_v12, %v543_v15 }
 0x368   :  { %v754_v18 = vpop.f32.mrf.mxu1 }
 0x369   :  { %v637_v19 = vpack.c.bf16 %v559_v16, %v559_v16  ;;  %v557_v20 = vmax.f32 %v544_v17, 0.0 }
 0x36a   :  { %v546_v21 = vpop.f32.mrf.mxu1 }
 0x36b   :  { %v635_v22 = vpack.c.bf16 %v557_v20, %v557_v20  ;;  %v547_v23 = vadd.f32 %v623_v12, %v546_v21  ;;  %576 = vst.msk [vmem:[#allocation7 + $0x8] sm:$0xf] %vm573_vm2, %v637_v19 }
 0x36d   :  { %v558_v24 = vmax.f32 %v547_v23, 0.0  ;;  %574 = vst.msk [vmem:[#allocation7] sm:$0xf] %vm573_vm2, %v635_v22 }
 0x36f   :  { %v636_v25 = vpack.c.bf16 %v558_v24, %v558_v24 }
 0x371   :  { %575 = vst.msk [vmem:[#allocation7 + $0x4] sm:$0xf] %vm573_vm2, %v636_v25 }
 0x372   :  { %845 = shalt.err (!%p842_p0)
}
 0x373   :  { %588 = dma.vmem_to_hbm [thread:$0]  %s583_s5, 192, %s1024_s9, [#allocation4], %s864_s19, %s864_s19, %s865_s20  }
 0x374   :  { %858 = dma.done.wait [#allocation4], 192  }
 0x375   :  { %859 = vsyncadd [#allocation4], 4294967104 }
 0x376   :  { %592 = vsyncpa [#allocation3], 1 }
 0x377   :  { %593 = vsyncpa [#allocation6], 1 }
 0x378   :  { %594 = vsyncpa [#allocation4], 1 }

</bundles_post_ra>
